<compile_context>
chip_gen: v7x
topology: tpu7x:2x2x1
jax: 0.10.0
libtpu: 0.0.40
codegen_flags: <defaults>
</compile_context>

<pallas_src>
import functools

import jax
import jax.numpy as jnp
from jax.experimental import pallas as pl
from jax.experimental.pallas import tpu as pltpu

IN_FEATURES = 2 * 14 * 14  # 392


def _round_up(x, m):
    return (x + m - 1) // m * m


def _mlp_kernel(x_ref, w1_ref, b1_ref, w2_ref, b2_ref, wc_ref, bc_ref,
                out_ref, *, hidden):
    """One batch tile. out[:, :hidden] = features, out[:, hidden] = prob."""
    x = x_ref[...]                                                  # (TB, 392) bf16

    h1 = jnp.dot(x, w1_ref[...], preferred_element_type=jnp.float32)
    h1 = jnp.maximum(h1 + b1_ref[...], 0.0)                         # (TB, HPAD) f32

    h2 = jnp.dot(h1.astype(jnp.bfloat16), w2_ref[...],
                 preferred_element_type=jnp.float32)
    h2 = jnp.maximum(h2 + b2_ref[...], 0.0)                         # (TB, OUTW) f32
    # Columns >= hidden of h2 are exactly zero (zero-padded W2 / b2).

    # Classifier (N=1): VPU broadcast-multiply + XLU lane reduction instead of
    # an MXU matmul that would use 1/128th of the systolic array.
    logits = jnp.sum(h2 * wc_ref[...], axis=-1, keepdims=True) + bc_ref[...]
    prob = jax.nn.sigmoid(logits)                                   # (TB, 1) f32

    # Pack prob into lane `hidden` of the (already-zero) padded feature block
    # so the writeback is a single lane-dense, unmasked store.
    lane = jax.lax.broadcasted_iota(jnp.int32, h2.shape, 1)
    out_ref[...] = jnp.where(lane == hidden, prob, h2)


@functools.partial(jax.jit, static_argnames=("block_batch",))
def mnist_mlp_forward(x_nchw, w1, b1, w2, b2, wc, bc, *, block_batch=1024):
    """x_nchw: (B, 2, 14, 14) float32.  Returns (features, sigmoid(logits))."""
    batch = x_nchw.shape[0]
    hidden = w1.shape[1]
    hpad = _round_up(hidden, 128)          # lane width of hidden activations
    outw = _round_up(hidden + 1, 128)      # lane width of packed output

    # prepare_input: row-major flatten (identical to torch .view); bf16 stream.
    x2d = jnp.reshape(x_nchw, (batch, IN_FEATURES)).astype(jnp.bfloat16)

    # Batch tile: multiple of 8 sublanes, capped at block_batch.  The default
    # of 1024 (~4-5 MiB VMEM with double-buffering) fits every generation's
    # default scoped-VMEM budget; raise block_batch (2048-4096) on v5e/v6e
    # together with vmem_limit_bytes for a few extra % of HBM roofline.
    tb = max(8, min(_round_up(block_batch, 8), _round_up(batch, 8)))
    b_pad = _round_up(batch, tb)
    if b_pad != batch:
        x2d = jnp.pad(x2d, ((0, b_pad - batch), (0, 0)))

    # Pad weights/biases to lane-aligned widths; weights stream as bf16.
    w1p = jnp.pad(w1.astype(jnp.bfloat16), ((0, 0), (0, hpad - hidden)))
    b1p = jnp.pad(b1.reshape(1, hidden).astype(jnp.float32),
                  ((0, 0), (0, hpad - hidden)))
    w2p = jnp.pad(w2.astype(jnp.bfloat16),
                  ((0, hpad - hidden), (0, outw - hidden)))
    b2p = jnp.pad(b2.reshape(1, hidden).astype(jnp.float32),
                  ((0, 0), (0, outw - hidden)))
    wcp = jnp.pad(wc.reshape(1, hidden).astype(jnp.float32),
                  ((0, 0), (0, outw - hidden)))
    bcp = bc.reshape(1, 1).astype(jnp.float32)

    grid = (pl.cdiv(b_pad, tb),)
    const = lambda i: (0, 0)  # resident blocks (weights / biases)

    flops = 2 * batch * (IN_FEATURES * hidden + hidden * hidden + hidden)
    bytes_accessed = (
        b_pad * IN_FEATURES * 2            # x (bf16)
        + b_pad * outw * 4                 # packed output (f32)
        + (w1p.size + w2p.size) * 2        # weights (bf16)
        + (b1p.size + b2p.size + wcp.size + bcp.size) * 4)

    packed = pl.pallas_call(
        functools.partial(_mlp_kernel, hidden=hidden),
        out_shape=jax.ShapeDtypeStruct((b_pad, outw), jnp.float32),
        grid=grid,
        in_specs=[
            pl.BlockSpec((tb, IN_FEATURES), lambda i: (i, 0)),  # x tile
            pl.BlockSpec((IN_FEATURES, hpad), const),           # W1
            pl.BlockSpec((1, hpad), const),                     # b1
            pl.BlockSpec((hpad, outw), const),                  # W2
            pl.BlockSpec((1, outw), const),                     # b2
            pl.BlockSpec((1, outw), const),                     # Wc (row vector)
            pl.BlockSpec((1, 1), const),                        # bc
        ],
        out_specs=pl.BlockSpec((tb, outw), lambda i: (i, 0)),
        compiler_params=pltpu.CompilerParams(
            dimension_semantics=("parallel",),
            vmem_limit_bytes=32 * 1024 * 1024,
        ),
        cost_estimate=pl.CostEstimate(
            flops=flops, transcendentals=batch, bytes_accessed=bytes_accessed),
    )(x2d, w1p, b1p, w2p, b2p, wcp, bcp)

    features = packed[:batch, :hidden]
    probs = packed[:batch, hidden:hidden + 1]
    return features, probs


def _xavier_uniform(key, fan_in, fan_out):
    """Matches torch.nn.init.xavier_uniform_ bounds; stored as (in, out)."""
    limit = (6.0 / (fan_in + fan_out)) ** 0.5
    return jax.random.uniform(
        key, (fan_in, fan_out), dtype=jnp.float32, minval=-limit, maxval=limit
    )


def init_params(key, hidden_dim):
    k1, k2, k3 = jax.random.split(key, 3)
    w1 = _xavier_uniform(k1, IN_FEATURES, hidden_dim)
    b1 = jnp.zeros((hidden_dim,), jnp.float32)
    w2 = _xavier_uniform(k2, hidden_dim, hidden_dim)
    b2 = jnp.zeros((hidden_dim,), jnp.float32)
    wc = _xavier_uniform(k3, hidden_dim, 1)
    bc = jnp.zeros((1,), jnp.float32)
    return w1, b1, w2, b2, wc, bc


if __name__ == "__main__":
    hidden_dim = 32
    batch = 4

    key = jax.random.PRNGKey(0)
    k_x, k_p = jax.random.split(key)

    x = jax.random.normal(k_x, (batch, 2, 14, 14), dtype=jnp.float32)
    params = init_params(k_p, hidden_dim)

    features, probs = mnist_mlp_forward(x, *params)
    jax.block_until_ready((features, probs))

    assert features.shape == (batch, hidden_dim)
    assert probs.shape == (batch, 1)

    w1, b1, w2, b2, wc, bc = params
    x2d = x.reshape(batch, IN_FEATURES)

    # Reference 1: same math with the same bf16 rounding of x/W/h1, f32 accum.
    bf = lambda a: a.astype(jnp.bfloat16).astype(jnp.float32)
    h_bf = jnp.maximum(bf(x2d) @ bf(w1) + b1, 0.0)
    h_bf = jnp.maximum(bf(h_bf) @ bf(w2) + b2, 0.0)
    p_bf = jax.nn.sigmoid(h_bf @ wc + bc)
    assert jnp.allclose(features, h_bf, atol=2e-3, rtol=2e-3)
    assert jnp.allclose(probs, p_bf, atol=2e-3, rtol=2e-3)

    # Reference 2: full-precision f32 module semantics (loose tol: bf16 stream).
    h = jnp.maximum(x2d @ w1 + b1, 0.0)
    h = jnp.maximum(h @ w2 + b2, 0.0)
    p = jax.nn.sigmoid(h @ wc + bc)
    assert jnp.allclose(features, h, atol=5e-2, rtol=5e-2)
    assert jnp.allclose(probs, p, atol=5e-2, rtol=5e-2)

    print("KERNEL_OK")
</pallas_src>

<mosaic_0001>
module attributes {stable_mosaic.version = 11 : i64} {
  func.func @_mlp_kernel(%arg0: i32, %arg1: memref<8x392xbf16, #tpu.memory_space<vmem>>, %arg2: memref<392x128xbf16, #tpu.memory_space<vmem>>, %arg3: memref<1x128xf32, #tpu.memory_space<vmem>>, %arg4: memref<128x128xbf16, #tpu.memory_space<vmem>>, %arg5: memref<1x128xf32, #tpu.memory_space<vmem>>, %arg6: memref<1x128xf32, #tpu.memory_space<vmem>>, %arg7: memref<1x1xf32, #tpu.memory_space<vmem>>, %arg8: memref<8x128xf32, #tpu.memory_space<vmem>>) attributes {dimension_semantics = [#tpu.dimension_semantics<parallel>], iteration_bounds = array<i64: 1>, scalar_prefetch = 0 : i64, scratch_operands = 0 : i64, tpu.core_type = #tpu.core_type<tc>, window_params = [{transform_indices = @transform_0, window_bounds = array<i64: 8, 392>}, {pipeline_mode = #tpu.pipeline_mode<synchronous>, transform_indices = @transform_1, window_bounds = array<i64: 392, 128>}, {pipeline_mode = #tpu.pipeline_mode<synchronous>, transform_indices = @transform_2, window_bounds = array<i64: 1, 128>}, {pipeline_mode = #tpu.pipeline_mode<synchronous>, transform_indices = @transform_3, window_bounds = array<i64: 128, 128>}, {pipeline_mode = #tpu.pipeline_mode<synchronous>, transform_indices = @transform_4, window_bounds = array<i64: 1, 128>}, {pipeline_mode = #tpu.pipeline_mode<synchronous>, transform_indices = @transform_5, window_bounds = array<i64: 1, 128>}, {pipeline_mode = #tpu.pipeline_mode<synchronous>, transform_indices = @transform_6, window_bounds = array<i64: 1, 1>}, {transform_indices = @transform_7, window_bounds = array<i64: 8, 128>}]} {
    %c0 = arith.constant 0 : index
    %c0_0 = arith.constant 0 : index
    %0 = vector.load %arg1[%c0, %c0_0] : memref<8x392xbf16, #tpu.memory_space<vmem>>, vector<8x392xbf16>
    %c0_1 = arith.constant 0 : index
    %c0_2 = arith.constant 0 : index
    %1 = vector.load %arg2[%c0_1, %c0_2] : memref<392x128xbf16, #tpu.memory_space<vmem>>, vector<392x128xbf16>
    %cst = arith.constant dense<0.000000e+00> : vector<8x128xf32>
    %2 = tpu.matmul %0, %1, %cst {dimension_numbers = #tpu.dot_dimension_numbers<[1], [0], [0], [1], [0, 0, 1, 1], [], []>} : vector<8x392xbf16>, vector<392x128xbf16>, vector<8x128xf32> -> vector<8x128xf32>
    %c0_3 = arith.constant 0 : index
    %c0_4 = arith.constant 0 : index
    %3 = vector.load %arg3[%c0_3, %c0_4] : memref<1x128xf32, #tpu.memory_space<vmem>>, vector<1x128xf32>
    %4 = vector.broadcast %3 : vector<1x128xf32> to vector<8x128xf32>
    %5 = arith.addf %2, %4 : vector<8x128xf32>
    %cst_5 = arith.constant 0.000000e+00 : f32
    %6 = vector.broadcast %cst_5 : f32 to vector<8x128xf32>
    %7 = arith.maximumf %5, %6 : vector<8x128xf32>
    %8 = arith.truncf %7 : vector<8x128xf32> to vector<8x128xbf16>
    %c0_6 = arith.constant 0 : index
    %c0_7 = arith.constant 0 : index
    %9 = vector.load %arg4[%c0_6, %c0_7] : memref<128x128xbf16, #tpu.memory_space<vmem>>, vector<128x128xbf16>
    %cst_8 = arith.constant dense<0.000000e+00> : vector<8x128xf32>
    %10 = tpu.matmul %8, %9, %cst_8 {dimension_numbers = #tpu.dot_dimension_numbers<[1], [0], [0], [1], [0, 0, 1, 1], [], []>} : vector<8x128xbf16>, vector<128x128xbf16>, vector<8x128xf32> -> vector<8x128xf32>
    %c0_9 = arith.constant 0 : index
    %c0_10 = arith.constant 0 : index
    %11 = vector.load %arg5[%c0_9, %c0_10] : memref<1x128xf32, #tpu.memory_space<vmem>>, vector<1x128xf32>
    %12 = vector.broadcast %11 : vector<1x128xf32> to vector<8x128xf32>
    %13 = arith.addf %10, %12 : vector<8x128xf32>
    %cst_11 = arith.constant 0.000000e+00 : f32
    %14 = vector.broadcast %cst_11 : f32 to vector<8x128xf32>
    %15 = arith.maximumf %13, %14 : vector<8x128xf32>
    %c0_12 = arith.constant 0 : index
    %c0_13 = arith.constant 0 : index
    %16 = vector.load %arg6[%c0_12, %c0_13] : memref<1x128xf32, #tpu.memory_space<vmem>>, vector<1x128xf32>
    %17 = vector.broadcast %16 : vector<1x128xf32> to vector<8x128xf32>
    %18 = arith.mulf %15, %17 : vector<8x128xf32>
    %cst_14 = arith.constant dense<0.000000e+00> : vector<8xf32>
    %19 = vector.multi_reduction <add>, %18, %cst_14 [1] : vector<8x128xf32> to vector<8xf32>
    %20 = vector.shape_cast %19 : vector<8xf32> to vector<8x1xf32>
    %c0_15 = arith.constant 0 : index
    %c0_16 = arith.constant 0 : index
    %21 = vector.load %arg7[%c0_15, %c0_16] : memref<1x1xf32, #tpu.memory_space<vmem>>, vector<1x1xf32>
    %22 = vector.broadcast %21 : vector<1x1xf32> to vector<8x1xf32>
    %23 = arith.addf %20, %22 : vector<8x1xf32>
    %24 = arith.negf %23 : vector<8x1xf32>
    %25 = math.exp %24 : vector<8x1xf32>
    %cst_17 = arith.constant 1.000000e+00 : f32
    %26 = vector.broadcast %cst_17 : f32 to vector<8x1xf32>
    %27 = arith.addf %26, %25 : vector<8x1xf32>
    %28 = arith.divf %26, %27 : vector<8x1xf32>
    %29 = tpu.iota {dimensions = array<i32: 1>} : vector<8x128xi32>
    %c32_i32 = arith.constant 32 : i32
    %30 = vector.broadcast %c32_i32 : i32 to vector<8x128xi32>
    %31 = arith.cmpi eq, %29, %30 : vector<8x128xi32>
    %32 = vector.shape_cast %28 : vector<8x1xf32> to vector<8x1xf32>
    %33 = vector.broadcast %32 : vector<8x1xf32> to vector<8x128xf32>
    %34 = arith.select %31, %33, %15 : vector<8x128xi1>, vector<8x128xf32>
    %c0_18 = arith.constant 0 : index
    %c0_19 = arith.constant 0 : index
    %35 = vector.load %arg8[%c0_18, %c0_19] : memref<8x128xf32, #tpu.memory_space<vmem>>, vector<8x128xf32>
    tpu.vector_store %arg8[%c0_18, %c0_19], %34 {strides = array<i32>} : memref<8x128xf32, #tpu.memory_space<vmem>>, vector<8x128xf32>,
    return
  }
  func.func @transform_0(%arg0: i32) -> (i32, i32) {
    %c0_i32 = arith.constant 0 : i32
    %c0_i32_0 = arith.constant 0 : i32
    return %arg0, %c0_i32 : i32, i32
  }
  func.func @transform_1(%arg0: i32) -> (i32, i32) {
    %c0_i32 = arith.constant 0 : i32
    %c0_i32_0 = arith.constant 0 : i32
    %c0_i32_1 = arith.constant 0 : i32
    return %c0_i32, %c0_i32_0 : i32, i32
  }
  func.func @transform_2(%arg0: i32) -> (i32, i32) {
    %c0_i32 = arith.constant 0 : i32
    %c0_i32_0 = arith.constant 0 : i32
    %c0_i32_1 = arith.constant 0 : i32
    return %c0_i32, %c0_i32_0 : i32, i32
  }
  func.func @transform_3(%arg0: i32) -> (i32, i32) {
    %c0_i32 = arith.constant 0 : i32
    %c0_i32_0 = arith.constant 0 : i32
    %c0_i32_1 = arith.constant 0 : i32
    return %c0_i32, %c0_i32_0 : i32, i32
  }
  func.func @transform_4(%arg0: i32) -> (i32, i32) {
    %c0_i32 = arith.constant 0 : i32
    %c0_i32_0 = arith.constant 0 : i32
    %c0_i32_1 = arith.constant 0 : i32
    return %c0_i32, %c0_i32_0 : i32, i32
  }
  func.func @transform_5(%arg0: i32) -> (i32, i32) {
    %c0_i32 = arith.constant 0 : i32
    %c0_i32_0 = arith.constant 0 : i32
    %c0_i32_1 = arith.constant 0 : i32
    return %c0_i32, %c0_i32_0 : i32, i32
  }
  func.func @transform_6(%arg0: i32) -> (i32, i32) {
    %c0_i32 = arith.constant 0 : i32
    %c0_i32_0 = arith.constant 0 : i32
    %c0_i32_1 = arith.constant 0 : i32
    return %c0_i32, %c0_i32_0 : i32, i32
  }
  func.func @transform_7(%arg0: i32) -> (i32, i32) {
    %c0_i32 = arith.constant 0 : i32
    %c0_i32_0 = arith.constant 0 : i32
    return %arg0, %c0_i32 : i32, i32
  }
}

</mosaic_0001>

<bundles_post_ra>
// kernel: mnist_mlp_forward.1
= control target key start
LH: loop header
LB: loop body
LE: loop exit
PB: predicated region body
PF: predicated region fallthrough
CT: control target
= control target key end

     0   :  { %v626_v0 = vmov 0   ;;  %vm247_vm0 = vcmask 64512   ;;  %vm251_vm1 = vcmask 1043456   ;;  %v627_v33 = vmov 0.0   ;;  %s799_s1 = inlined_call_operand.vmem [shape: bf16[392,128], index: 1, kind: input, shape index: {}]   ;;  %s800_s0 = inlined_call_operand.vmem [shape: bf16[8,392], index: 0, kind: input, shape index: {}]   ;;  %s801_s3 = inlined_call_operand.vmem [shape: bf16[128,128], index: 3, kind: input, shape index: {}]   ;;  %s802_s2 = inlined_call_operand.vmem [shape: f32[1,128], index: 2, kind: input, shape index: {}]   ;;  %s803_s6 = inlined_call_operand.<no memory space> [shape: f32[1,1], index: 6, kind: input, shape index: {}]   ;;  %s804_s4 = inlined_call_operand.vmem [shape: f32[1,128], index: 4, kind: input, shape index: {}]   ;;  %s805_s5 = inlined_call_operand.vmem [shape: f32[1,128], index: 5, kind: input, shape index: {}]   ;;  %s806_s7 = inlined_call_operand.vmem [shape: f32[8,128], index: 7, kind: output, shape index: {}]  }
   0x1   :  { %295 = vmatprep.subr.bf16.mxu1 %v626_v0  ;;  %v585_v1 = vld [vmem:[%s799_s1 + $0x40] sm:$0xff]   ;;  %584 = vset.pattern.permute.xlu0 %v626_v0  ;;  %v588_v4 = vld [vmem:[%s799_s1 + $0x48] sm:$0xff]   ;;  %v591_v7 = vld [vmem:[%s799_s1 + $0x50] sm:$0xff]   ;;  %vm628_vm2 = vmmov 0   ;;  %v12_v56 = vstv %s803_s6 }
   0x2   :  { %v586_v2 = vld [vmem:[%s799_s1 + $0x80] sm:$0xff]   ;;  %530 = vmatprep.subr.bf16.mxu0 %v585_v1  ;;  %v589_v5 = vld [vmem:[%s799_s1 + $0x88] sm:$0xff]   ;;  %v592_v8 = vld [vmem:[%s799_s1 + $0x90] sm:$0xff]   ;;  %13 = vst [vmem:[#allocation2] sm:$0x1] %v12_v56 }
   0x3   :  { %v587_v3 = vld [vmem:[%s799_s1] sm:$0xff]   ;;  %296 = vmatpush1.bf16.msra.mxu1 %v586_v2  ;;  %v590_v6 = vld [vmem:[%s799_s1 + $0x8] sm:$0xff]   ;;  %v593_v9 = vld [vmem:[%s799_s1 + $0x10] sm:$0xff]  }
   0x4   :  { %531 = vmatpush3.bf16.msra.mxu0 %v587_v3  ;;  %297 = vmatprep.subr.bf16.mxu1 %v626_v0  ;;  %v594_v10 = vld [vmem:[%s799_s1 + $0x58] sm:$0xff]   ;;  %v597_v13 = vld [vmem:[%s799_s1 + $0x60] sm:$0xff]   ;;  %v600_v16 = vld [vmem:[%s799_s1 + $0x68] sm:$0xff]  }
   0x5   :  { %532 = vmatprep.subr.bf16.mxu0 %v588_v4  ;;  %v595_v11 = vld [vmem:[%s799_s1 + $0x98] sm:$0xff]   ;;  %v598_v14 = vld [vmem:[%s799_s1 + $0xa0] sm:$0xff]   ;;  %v601_v17 = vld [vmem:[%s799_s1 + $0xa8] sm:$0xff]  }
   0x6   :  { %v596_v12 = vld [vmem:[%s799_s1 + $0x18] sm:$0xff]   ;;  %v599_v15 = vld [vmem:[%s799_s1 + $0x20] sm:$0xff]   ;;  %v602_v18 = vld [vmem:[%s799_s1 + $0x28] sm:$0xff]  }
   0x7   :  { %298 = vmatpush1.bf16.msra.mxu1 %v589_v5  ;;  %v603_v19 = vld [vmem:[%s799_s1 + $0x70] sm:$0xff]   ;;  %v606_v22 = vld [vmem:[%s799_s1 + $0x78] sm:$0xff]   ;;  %v29_v23 = vld [vmem:[%s800_s0] sm:$0xff] }
   0x8   :  { %533 = vmatpush3.bf16.msra.mxu0 %v590_v6  ;;  %299 = vmatprep.subr.bf16.mxu1 %v626_v0  ;;  %v604_v20 = vld [vmem:[%s799_s1 + $0xb0] sm:$0xff]   ;;  %v489_v24 = vcombine.high %v29_v23, %v29_v23  ;;  %v30_v25 = vld [vmem:[%s800_s0 + $0x8] sm:$0xff]  ;;  %v607_v26 = vld [vmem:[%s799_s1 + $0xb8] sm:$0xff]   ;;  %v488_v30 = vcombine.low %v29_v23, %v29_v23 }
   0x9   :  { %534 = vmatprep.subr.bf16.mxu0 %v591_v7  ;;  %v605_v21 = vld [vmem:[%s799_s1 + $0x30] sm:$0xff]   ;;  %v491_v27 = vcombine.high %v30_v25, %v30_v25  ;;  %v608_v28 = vld [vmem:[%s799_s1 + $0x38] sm:$0xff]   ;;  %v611_v29 = vld [vmem:[%s799_s1 + $0xc0] ss:$0 sps:$4 sm:$0xff]   ;;  %v490_v34 = vcombine.low %v30_v25, %v30_v25 }
   0xa   :  { %287 = vmatprep.mubr.bf16.mxu0 %v489_v24  ;;  %v253_v31 = vsel %vm251_vm1, %v611_v29, 0  ;;  %v614_v32 = vld [vmem:[%s801_s3] sm:$0xff]   ;;  %v615_v35 = vld [vmem:[%s801_s3 + $0x8] sm:$0xff]   ;;  %v616_v36 = vld [vmem:[%s801_s3 + $0x10] sm:$0xff]  }
   0xb   :  { %300 = vmatpush1.bf16.msra.mxu1 %v592_v8  ;;  %517 = vmatprep.mubr.msk.bf16.mxu1 %vm247_vm0, %v491_v27  ;;  %v617_v37 = vld [vmem:[%s801_s3 + $0x18] sm:$0xff]   ;;  %v618_v38 = vld [vmem:[%s801_s3 + $0x20] sm:$0xff]   ;;  %v619_v39 = vld [vmem:[%s801_s3 + $0x28] sm:$0xff]  }
   0xc   :  { %535 = vmatpush3.bf16.msra.mxu0 %v593_v9  ;;  %301 = vmatprep.subr.bf16.mxu1 %v626_v0  ;;  %v620_v40 = vld [vmem:[%s801_s3 + $0x30] sm:$0xff]   ;;  %v621_v41 = vld [vmem:[%s801_s3 + $0x38] sm:$0xff]   ;;  %v487_v44 = vld [vmem:[%s802_s2] ss:$0 sm:$0xff]  ;;  %v473_v9 = vlaneseq }
   0xd   :  { %536 = vmatprep.subr.bf16.mxu0 %v594_v10  ;;  %v518_v57 = vld [vmem:[%s804_s4] ss:$0 sm:$0xff] }
   0xe   :  { %v527_v62 = vld [vmem:[%s805_s5] ss:$0 sm:$0xff]  ;;  %v474_v10 = vand.u32 127, %v473_v9 }
   0xf   :  { %302 = vmatpush1.bf16.msra.mxu1 %v595_v11  ;;  %v528_v2 = vld [vmem:[#allocation2] ss:$0 sm:$0xff] }
  0x10   :  { %537 = vmatpush3.bf16.msra.mxu0 %v596_v12  ;;  %303 = vmatprep.subr.bf16.mxu1 %v626_v0  ;;  %vm475_vm3 = vcmp.eq.s32.totalorder %v474_v10, 32 }
  0x11   :  { %538 = vmatprep.subr.bf16.mxu0 %v597_v13 }
  0x13   :  { %304 = vmatpush1.bf16.msra.mxu1 %v598_v14 }
  0x14   :  { %539 = vmatpush3.bf16.msra.mxu0 %v599_v15  ;;  %305 = vmatprep.subr.bf16.mxu1 %v626_v0 }
  0x15   :  { %540 = vmatprep.subr.bf16.mxu0 %v600_v16 }
  0x17   :  { %306 = vmatpush1.bf16.msra.mxu1 %v601_v17 }
  0x18   :  { %541 = vmatpush3.bf16.msra.mxu0 %v602_v18  ;;  %307 = vmatprep.subr.bf16.mxu1 %v626_v0 }
  0x19   :  { %542 = vmatprep.subr.bf16.mxu0 %v603_v19 }
  0x1b   :  { %308 = vmatpush1.bf16.msra.mxu1 %v604_v20 }
  0x1c   :  { %543 = vmatpush3.bf16.msra.mxu0 %v605_v21  ;;  %309 = vmatprep.subr.bf16.mxu1 %v626_v0 }
  0x1d   :  { %544 = vmatprep.subr.bf16.mxu0 %v606_v22 }
  0x1f   :  { %310 = vmatpush1.bf16.msra.mxu1 %v607_v26 }
  0x20   :  { %545 = vmatpush3.bf16.msra.mxu0 %v608_v28  ;;  %311 = vmatprep.subr.bf16.mxu1 %v626_v0 }
  0x21   :  { %561 = vmatprep.subr.bf16.mxu0 %v627_v33 }
  0x23   :  { %288 = vmatmul.mubr.bf16.vlgmr.msra.gmra.mrb[0].mxu0 %v488_v30  ;;  %312 = vmatpush1.bf16.msra.mxu1 %v253_v31 }
  0x24   :  { %562 = vmatpush3.bf16.msra.mxu0 %v614_v32  ;;  %577 = vmatprep.mubr.msk.bf16.mxu0 %vm628_vm2, %v627_v33 }
  0x25   :  { %563 = vmatprep.subr.bf16.mxu0 %v627_v33 }
  0x26   :  { %328 = vmatmul.mubr.bf16.vlgmr.msra.gmra.mrb[0].mxu1 %v490_v34 }
  0x28   :  { %564 = vmatpush3.bf16.msra.mxu0 %v615_v35 }
  0x29   :  { %565 = vmatprep.subr.bf16.mxu0 %v627_v33 }
  0x2c   :  { %566 = vmatpush3.bf16.msra.mxu0 %v616_v36 }
  0x2d   :  { %567 = vmatprep.subr.bf16.mxu0 %v627_v33 }
  0x30   :  { %568 = vmatpush3.bf16.msra.mxu0 %v617_v37 }
  0x31   :  { %569 = vmatprep.subr.bf16.mxu0 %v627_v33 }
  0x34   :  { %570 = vmatpush3.bf16.msra.mxu0 %v618_v38 }
  0x35   :  { %571 = vmatprep.subr.bf16.mxu0 %v627_v33 }
  0x38   :  { %572 = vmatpush3.bf16.msra.mxu0 %v619_v39 }
  0x39   :  { %573 = vmatprep.subr.bf16.mxu0 %v627_v33 }
  0x3c   :  { %574 = vmatpush3.bf16.msra.mxu0 %v620_v40 }
  0x3d   :  { %575 = vmatprep.subr.bf16.mxu0 %v627_v33 }
  0x40   :  { %576 = vmatpush3.bf16.msra.mxu0 %v621_v41 }
  0xf6   :  { %v546_v42 = vpop.f32.mrb[0].mxu0 }
  0xf7   :  { %v547_v43 = vpop.f32.mrb[1].mxu0 }
  0xf8   :  { %v548_v45 = vadd.f32 %v547_v43, %v546_v42  ;;  %v549_v46 = vpop.f32.mrb[2].mxu0 }
  0xf9   :  { %v550_v47 = vpop.f32.mrb[3].mxu0  ;;  %v329_v48 = vpop.f32.mrb[0].mxu1 }
  0xfa   :  { %v290_v49 = vadd.f32 %v548_v45, %v487_v44  ;;  %v331_v50 = vpop.f32.mrb[1].mxu1 }
  0xfb   :  { %v332_v51 = vpop.f32.mrb[2].mxu1 }
  0xfc   :  { %v330_v52 = vadd.f32 %v329_v48, %v290_v49  ;;  %v333_v53 = vpop.f32.mrb[3].mxu1 }
  0xfe   :  { %v335_v54 = vmax.f32 %v330_v52, 0.0 }
 0x100   :  { %v336_v55 = vpack.c.bf16 %v335_v54, %v335_v54 }
 0x102   :  { %578 = vmatmul.mubr.bf16.vlgmr.msra.gmra.mrb[4].mxu0 %v336_v55 }
 0x1d5   :  { %v442_v58 = vpop.f32.mrb[4].mxu0 }
 0x1d6   :  { %v443_v59 = vadd.f32 %v518_v57, %v442_v58  ;;  %v579_v60 = vpop.f32.mrb[5].mxu0 }
 0x1d7   :  { %v445_v61 = vpop.f32.mrb[6].mxu0 }
 0x1d8   :  { %v448_v63 = vmax.f32 %v443_v59, 0.0  ;;  %v580_v0 = vpop.f32.mrb[7].mxu0 }
 0x1da   :  { %v456_v1 = vmul.f32 %v527_v62, %v448_v63 }
 0x1dc   :  { %457 = vadd.xlane.f32.xlu0 %v456_v1 }
 0x269   :  { %v458_v3 = vpop.xlane.xlu0 %457 }
 0x26a   :  { %v466_v4 = vadd.f32 %v528_v2, %v458_v3 }
 0x26c   :  { %v529_v5 = vmul.f32 -1.442695, %v466_v4 }
 0x26e   :  { %622 = vpow2.f32 %v529_v5 }
 0x278   :  { %v623_v6 = vpop.eup %622 }
 0x279   :  { %v470_v7 = vadd.f32 1.0, %v623_v6 }
 0x27b   :  { %624 = vrcp.f32 %v470_v7 }
 0x285   :  { %v625_v8 = vpop.eup %624 }
 0x286   :  { %478 = vperm.xlu0 %584, %v625_v8  }
 0x305   :  { %v479_v11 = vpop.permute.xlu0 %478 }
 0x306   :  { %v481_v12 = vsel %vm475_vm3, %v479_v11, %v448_v63 }
 0x307   :  { %482 = vst [vmem:[%s806_s7] sm:$0xff] %v481_v12 }

</bundles_post_ra>
